<compile_context>
chip_gen: v7x
topology: tpu7x:2x2x1
jax: 0.10.0
libtpu: 0.0.40
codegen_flags: <defaults>
</compile_context>

<pallas_src>
import functools

import jax
import jax.numpy as jnp
import numpy as np
from jax.experimental import pallas as pl
from jax.experimental.pallas import tpu as pltpu


def _round_up(x, m):
    return ((x + m - 1) // m) * m


def _backproject_kernel(invk_ref, depth_ref, out_ref, *, tile_h, width):
    # invk_ref:  (B*16,)          f32 SMEM, row-major flattened 4x4 inv_K per batch
    # depth_ref: (TILE_H, W)      f32 VMEM depth tile
    # out_ref:   (4, TILE_H, W)   f32 VMEM cam_points tile
    b = pl.program_id(0)
    t = pl.program_id(1)

    base = b * 16
    k00 = invk_ref[base + 0]
    k01 = invk_ref[base + 1]
    k02 = invk_ref[base + 2]
    k10 = invk_ref[base + 4]
    k11 = invk_ref[base + 5]
    k12 = invk_ref[base + 6]
    k20 = invk_ref[base + 8]
    k21 = invk_ref[base + 9]
    k22 = invk_ref[base + 10]

    # Pixel coordinates for this tile: x along lanes, y along sublanes.
    x = jax.lax.broadcasted_iota(jnp.int32, (tile_h, width), 1).astype(jnp.float32)
    y = (jax.lax.broadcasted_iota(jnp.int32, (tile_h, width), 0)
         + t * tile_h).astype(jnp.float32)

    d = depth_ref[...]

    # cam_points[:3] = depth * (inv_K[:3,:3] @ [x; y; 1]); row 3 is homogeneous ones.
    out_ref[0] = (k00 * x + k01 * y + k02) * d
    out_ref[1] = (k10 * x + k11 * y + k12) * d
    out_ref[2] = (k20 * x + k21 * y + k22) * d
    out_ref[3] = jnp.ones_like(d)


def _choose_tile_h(batch, height, width, target_elems=256 * 1024):
    """Rows per tile: a multiple of 8 (or the full height), ~target_elems big."""
    if height <= 8:
        return height
    budget = max(8, (target_elems // max(width, 1)) // 8 * 8)
    tile_h = min(budget, _round_up(height, 8))
    if batch == 1:
        # Keep at least two row tiles so v7x's two TensorCores both get work.
        tile_h = min(tile_h, max(8, _round_up((height + 1) // 2, 8)))
    if tile_h >= height:
        return height  # single full-height block (full-dim block is always legal)
    return tile_h


def backproject_depth(depth, inv_K, height, width):
    """depth: (B, 1, H, W) f32, inv_K: (B, 4, 4) f32  ->  (B, 4, H*W) f32."""
    batch = depth.shape[0]
    n = height * width

    depth_hw = depth.reshape(batch, height, width).astype(jnp.float32)
    invk_flat = inv_K.astype(jnp.float32).reshape(batch * 16)

    tile_h = _choose_tile_h(batch, height, width)
    grid = (batch, pl.cdiv(height, tile_h))

    kernel = functools.partial(_backproject_kernel, tile_h=tile_h, width=width)

    out = pl.pallas_call(
        kernel,
        out_shape=jax.ShapeDtypeStruct((batch, 4, height, width), jnp.float32),
        grid=grid,
        in_specs=[
            # Flattened inv_K lives whole in SMEM; read as scalars in-kernel.
            pl.BlockSpec(memory_space=pltpu.MemorySpace.SMEM),
            # Per-(batch, row-tile) depth block; batch dim squeezed out.
            pl.BlockSpec((None, tile_h, width), lambda b, t: (b, t, 0)),
        ],
        out_specs=pl.BlockSpec((None, 4, tile_h, width), lambda b, t: (b, 0, t, 0)),
        compiler_params=pltpu.CompilerParams(
            dimension_semantics=("parallel", "parallel"),
            vmem_limit_bytes=32 * 1024 * 1024,
        ),
        cost_estimate=pl.CostEstimate(
            flops=15 * batch * n,
            transcendentals=0,
            bytes_accessed=(1 + 4) * batch * n * 4 + batch * 16 * 4,
        ),
    )(invk_flat, depth_hw)

    # Contiguous (free) reshape to the module's (B, 4, H*W) output layout.
    return out.reshape(batch, 4, n)


def backproject_depth_ref(depth, inv_K, height, width):
    """Pure-JAX reference mirroring the PyTorch forward."""
    batch = depth.shape[0]
    n = height * width
    xx, yy = jnp.meshgrid(
        jnp.arange(width, dtype=jnp.float32),
        jnp.arange(height, dtype=jnp.float32),
        indexing="xy",
    )
    pix = jnp.stack(
        [xx.reshape(-1), yy.reshape(-1), jnp.ones((n,), dtype=jnp.float32)], axis=0
    )                                                          # (3, N)
    pix_b = jnp.broadcast_to(pix[None], (batch, 3, n))         # (B, 3, N)
    cam = jnp.einsum("bij,bjn->bin", inv_K[:, :3, :3], pix_b)  # (B, 3, N)
    cam = depth.reshape(batch, 1, n) * cam
    ones = jnp.ones((batch, 1, n), dtype=jnp.float32)
    return jnp.concatenate([cam, ones], axis=1)                # (B, 4, N)


if __name__ == "__main__":
    batch, height, width = 2, 16, 16

    key = jax.random.PRNGKey(0)
    k_depth, k_invk = jax.random.split(key)

    # depth in NCHW: (B, 1, H, W), strictly positive
    depth = jax.random.uniform(
        k_depth, (batch, 1, height, width), dtype=jnp.float32, minval=0.1, maxval=10.0
    )
    # synthetic inverse intrinsics: identity-ish + small noise, (B, 4, 4)
    inv_K = (
        jnp.broadcast_to(jnp.eye(4, dtype=jnp.float32), (batch, 4, 4))
        + 0.05 * jax.random.normal(k_invk, (batch, 4, 4), dtype=jnp.float32)
    )

    out = backproject_depth(depth, inv_K, height, width)
    out = jax.block_until_ready(out)

    ref = backproject_depth_ref(depth, inv_K, height, width)
    np.testing.assert_allclose(np.asarray(out), np.asarray(ref), rtol=1e-5, atol=1e-5)

    print("KERNEL_OK")
</pallas_src>

<mosaic_0001>
module attributes {stable_mosaic.version = 11 : i64} {
  func.func @_backproject_kernel(%arg0: i32, %arg1: i32, %arg2: memref<32xf32, #tpu.memory_space<smem>>, %arg3: memref<1x16x16xf32, #tpu.memory_space<vmem>>, %arg4: memref<1x4x16x16xf32, #tpu.memory_space<vmem>>) attributes {dimension_semantics = [#tpu.dimension_semantics<parallel>, #tpu.dimension_semantics<parallel>], iteration_bounds = array<i64: 2, 1>, scalar_prefetch = 0 : i64, scratch_operands = 0 : i64, tpu.core_type = #tpu.core_type<tc>, window_params = [{transform_indices = @transform_0, window_bounds = array<i64: 32>}, {transform_indices = @transform_1, window_bounds = array<i64: 1, 16, 16>}, {transform_indices = @transform_2, window_bounds = array<i64: 1, 4, 16, 16>}]} {
    %c16_i32 = arith.constant 16 : i32
    %0 = arith.muli %arg0, %c16_i32 : i32
    %c0_i32 = arith.constant 0 : i32
    %1 = arith.addi %0, %c0_i32 : i32
    %2 = arith.index_cast %1 : i32 to index
    %3 = memref.load %arg2[%2] : memref<32xf32, #tpu.memory_space<smem>>
    %c1_i32 = arith.constant 1 : i32
    %4 = arith.addi %0, %c1_i32 : i32
    %5 = arith.index_cast %4 : i32 to index
    %6 = memref.load %arg2[%5] : memref<32xf32, #tpu.memory_space<smem>>
    %c2_i32 = arith.constant 2 : i32
    %7 = arith.addi %0, %c2_i32 : i32
    %8 = arith.index_cast %7 : i32 to index
    %9 = memref.load %arg2[%8] : memref<32xf32, #tpu.memory_space<smem>>
    %c4_i32 = arith.constant 4 : i32
    %10 = arith.addi %0, %c4_i32 : i32
    %11 = arith.index_cast %10 : i32 to index
    %12 = memref.load %arg2[%11] : memref<32xf32, #tpu.memory_space<smem>>
    %c5_i32 = arith.constant 5 : i32
    %13 = arith.addi %0, %c5_i32 : i32
    %14 = arith.index_cast %13 : i32 to index
    %15 = memref.load %arg2[%14] : memref<32xf32, #tpu.memory_space<smem>>
    %c6_i32 = arith.constant 6 : i32
    %16 = arith.addi %0, %c6_i32 : i32
    %17 = arith.index_cast %16 : i32 to index
    %18 = memref.load %arg2[%17] : memref<32xf32, #tpu.memory_space<smem>>
    %c8_i32 = arith.constant 8 : i32
    %19 = arith.addi %0, %c8_i32 : i32
    %20 = arith.index_cast %19 : i32 to index
    %21 = memref.load %arg2[%20] : memref<32xf32, #tpu.memory_space<smem>>
    %c9_i32 = arith.constant 9 : i32
    %22 = arith.addi %0, %c9_i32 : i32
    %23 = arith.index_cast %22 : i32 to index
    %24 = memref.load %arg2[%23] : memref<32xf32, #tpu.memory_space<smem>>
    %c10_i32 = arith.constant 10 : i32
    %25 = arith.addi %0, %c10_i32 : i32
    %26 = arith.index_cast %25 : i32 to index
    %27 = memref.load %arg2[%26] : memref<32xf32, #tpu.memory_space<smem>>
    %28 = tpu.iota {dimensions = array<i32: 1>} : vector<16x16xi32>
    %29 = arith.sitofp %28 : vector<16x16xi32> to vector<16x16xf32>
    %30 = tpu.iota {dimensions = array<i32: 0>} : vector<16x16xi32>
    %c16_i32_0 = arith.constant 16 : i32
    %31 = arith.muli %arg1, %c16_i32_0 : i32
    %32 = vector.broadcast %31 : i32 to vector<16x16xi32>
    %33 = arith.addi %30, %32 : vector<16x16xi32>
    %34 = arith.sitofp %33 : vector<16x16xi32> to vector<16x16xf32>
    %c0 = arith.constant 0 : index
    %c0_1 = arith.constant 0 : index
    %c0_2 = arith.constant 0 : index
    %35 = vector.load %arg3[%c0, %c0_1, %c0_2] : memref<1x16x16xf32, #tpu.memory_space<vmem>>, vector<1x16x16xf32>
    %36 = vector.shape_cast %35 : vector<1x16x16xf32> to vector<16x16xf32>
    %37 = vector.broadcast %3 : f32 to vector<16x16xf32>
    %38 = arith.mulf %37, %29 : vector<16x16xf32>
    %39 = vector.broadcast %6 : f32 to vector<16x16xf32>
    %40 = arith.mulf %39, %34 : vector<16x16xf32>
    %41 = arith.addf %38, %40 : vector<16x16xf32>
    %42 = vector.broadcast %9 : f32 to vector<16x16xf32>
    %43 = arith.addf %41, %42 : vector<16x16xf32>
    %44 = arith.mulf %43, %36 : vector<16x16xf32>
    %c0_3 = arith.constant 0 : index
    %c0_4 = arith.constant 0 : index
    %c0_5 = arith.constant 0 : index
    %c0_6 = arith.constant 0 : index
    %45 = vector.load %arg4[%c0_3, %c0_4, %c0_5, %c0_6] : memref<1x4x16x16xf32, #tpu.memory_space<vmem>>, vector<1x1x16x16xf32>
    %46 = vector.shape_cast %45 : vector<1x1x16x16xf32> to vector<16x16xf32>
    %47 = vector.shape_cast %44 : vector<16x16xf32> to vector<1x1x16x16xf32>
    tpu.vector_store %arg4[%c0_3, %c0_4, %c0_5, %c0_6], %47 {strides = array<i32>} : memref<1x4x16x16xf32, #tpu.memory_space<vmem>>, vector<1x1x16x16xf32>,
    %48 = vector.broadcast %12 : f32 to vector<16x16xf32>
    %49 = arith.mulf %48, %29 : vector<16x16xf32>
    %50 = vector.broadcast %15 : f32 to vector<16x16xf32>
    %51 = arith.mulf %50, %34 : vector<16x16xf32>
    %52 = arith.addf %49, %51 : vector<16x16xf32>
    %53 = vector.broadcast %18 : f32 to vector<16x16xf32>
    %54 = arith.addf %52, %53 : vector<16x16xf32>
    %55 = arith.mulf %54, %36 : vector<16x16xf32>
    %c0_7 = arith.constant 0 : index
    %c1 = arith.constant 1 : index
    %c0_8 = arith.constant 0 : index
    %c0_9 = arith.constant 0 : index
    %56 = vector.load %arg4[%c0_7, %c1, %c0_8, %c0_9] : memref<1x4x16x16xf32, #tpu.memory_space<vmem>>, vector<1x1x16x16xf32>
    %57 = vector.shape_cast %56 : vector<1x1x16x16xf32> to vector<16x16xf32>
    %58 = vector.shape_cast %55 : vector<16x16xf32> to vector<1x1x16x16xf32>
    tpu.vector_store %arg4[%c0_7, %c1, %c0_8, %c0_9], %58 {strides = array<i32>} : memref<1x4x16x16xf32, #tpu.memory_space<vmem>>, vector<1x1x16x16xf32>,
    %59 = vector.broadcast %21 : f32 to vector<16x16xf32>
    %60 = arith.mulf %59, %29 : vector<16x16xf32>
    %61 = vector.broadcast %24 : f32 to vector<16x16xf32>
    %62 = arith.mulf %61, %34 : vector<16x16xf32>
    %63 = arith.addf %60, %62 : vector<16x16xf32>
    %64 = vector.broadcast %27 : f32 to vector<16x16xf32>
    %65 = arith.addf %63, %64 : vector<16x16xf32>
    %66 = arith.mulf %65, %36 : vector<16x16xf32>
    %c0_10 = arith.constant 0 : index
    %c2 = arith.constant 2 : index
    %c0_11 = arith.constant 0 : index
    %c0_12 = arith.constant 0 : index
    %67 = vector.load %arg4[%c0_10, %c2, %c0_11, %c0_12] : memref<1x4x16x16xf32, #tpu.memory_space<vmem>>, vector<1x1x16x16xf32>
    %68 = vector.shape_cast %67 : vector<1x1x16x16xf32> to vector<16x16xf32>
    %69 = vector.shape_cast %66 : vector<16x16xf32> to vector<1x1x16x16xf32>
    tpu.vector_store %arg4[%c0_10, %c2, %c0_11, %c0_12], %69 {strides = array<i32>} : memref<1x4x16x16xf32, #tpu.memory_space<vmem>>, vector<1x1x16x16xf32>,
    %cst = arith.constant 1.000000e+00 : f32
    %70 = vector.broadcast %cst : f32 to vector<16x16xf32>
    %c0_13 = arith.constant 0 : index
    %c3 = arith.constant 3 : index
    %c0_14 = arith.constant 0 : index
    %c0_15 = arith.constant 0 : index
    %71 = vector.load %arg4[%c0_13, %c3, %c0_14, %c0_15] : memref<1x4x16x16xf32, #tpu.memory_space<vmem>>, vector<1x1x16x16xf32>
    %72 = vector.shape_cast %71 : vector<1x1x16x16xf32> to vector<16x16xf32>
    %73 = vector.shape_cast %70 : vector<16x16xf32> to vector<1x1x16x16xf32>
    tpu.vector_store %arg4[%c0_13, %c3, %c0_14, %c0_15], %73 {strides = array<i32>} : memref<1x4x16x16xf32, #tpu.memory_space<vmem>>, vector<1x1x16x16xf32>,
    return
  }
  func.func @transform_0(%arg0: i32, %arg1: i32) -> i32 {
    %c0_i32 = arith.constant 0 : i32
    %c0_i32_0 = arith.constant 0 : i32
    return %c0_i32 : i32
  }
  func.func @transform_1(%arg0: i32, %arg1: i32) -> (i32, i32, i32) {
    %c0_i32 = arith.constant 0 : i32
    %c0_i32_0 = arith.constant 0 : i32
    return %arg0, %arg1, %c0_i32 : i32, i32, i32
  }
  func.func @transform_2(%arg0: i32, %arg1: i32) -> (i32, i32, i32, i32) {
    %c0_i32 = arith.constant 0 : i32
    %c0_i32_0 = arith.constant 0 : i32
    %c0_i32_1 = arith.constant 0 : i32
    return %arg0, %c0_i32, %arg1, %c0_i32_0 : i32, i32, i32, i32
  }
}

</mosaic_0001>

<bundles_post_ra>
// kernel: tpu_custom_call.1
= control target key start
LH: loop header
LB: loop body
LE: loop exit
PB: predicated region body
PF: predicated region fallthrough
CT: control target
= control target key end

     0   :  { %7 = vsyncpa [#allocation5], 0  ;;  %s893_s0 = inlined_call_operand.hbm [shape: f32[32], index: 0, kind: input, shape index: {}]   ;;  %s894_s1 = inlined_call_operand.hbm [shape: f32[2,16,16], index: 1, kind: input, shape index: {}]   ;;  %s895_s2 = inlined_call_operand.hbm [shape: f32[2,4,16,16], index: 2, kind: output, shape index: {}]  }
   0x1   :  { %8 = vsyncpa [#allocation3], 0 }
   0x2   :  { %10 = vsyncpa [#allocation3 + $0x1], 0 }
   0x3   :  { %11 = vsyncpa [#allocation4], 0 }
   0x4   :  { %13 = vsyncpa [#allocation4 + $0x1], 0  ;;  %s647_s9 = smov 0   ;;  %s649_s10 = smov 0  }
   0x5   :  { %s651_s11 = smov 0   ;;  %s653_s12 = smov 0  }
   0x6   :  { %s655_s13 = smov 0   ;;  %s657_s14 = smov 0  }
   0x7 LB: > { %s389_s15 = sadd.s32 4294967295, %s622_s14   ;;  %s390_s16 = sadd.s32 4294967294, %s622_s14   ;;  %s622_s14 = sphi %s657_s14, %s19_s14   ;;  %s618_s13 = sphi %s655_s13, %s915_s13   ;;  %s614_s12 = sphi %s653_s12, %s914_s12   ;;  %s610_s11 = sphi %s651_s11, %s913_s11   ;;  %s606_s10 = sphi %s649_s10, %s912_s10   ;;  %s602_s9 = sphi %s647_s9, %s911_s9  }
   0x8   : > { %s61_s17 = sadd.s32 1, %s610_s11  ;;  %p68_p0 = scmp.ne.s32.totalorder %s610_s11, %s606_s10 }
   0x9   : > { %p69_p1 = scmp.eq.s32.totalorder %s622_s14, 0  ;;  %p74_p2 = scmp.ne.s32.totalorder %s606_s10, %s602_s9 }
   0xa   : > { %p685_p3 = scmp.eq.s32.totalorder %s389_s15, 0  ;;  %p100_p4 = scmp.eq.s32.totalorder %s389_s15, 1 }
   0xb   : > { %p70_p5 = por %p69_p1, %p68_p0  ;;  %p106_p6 = scmp.eq.s32.totalorder %s390_s16, 1 }
   0xc   : > { %s900_s18 = scalar_select %p685_p3, 1, 0 }
   0xd   : > { %p691_p7 = por %p685_p3, %p74_p2  ;;  %p695_p8 = por %p100_p4, %p68_p0 }
   0xe   : > { %p699_p9 = por %p106_p6, %p74_p2  ;;  %p391_p10 = scmp.ge.s32.totalorder %s622_s14, 1 }
   0xf   : > { %s901_s19 = scalar_select %p691_p7, 1, 0 }
  0x10   : > { %s902_s20 = scalar_select %p695_p8, 1, 0 }
  0x11   : > { %s903_s21 = scalar_select %p699_p9, 1, 0 }
  0x12   : > { %p113_p11 = scmp.lt.s32.totalorder %s622_s14, 3  ;;  %p436_p1 = scmp.lt.s32.totalorder %s622_s14, 2 }
  0x13   : > { %s135_s23 = sand.u32 1, %s610_s11   ;;  %s31_s25 = sadd.s32 1, %s618_s13 }
  0x14   : > { %p706_p13 = pnand %p391_p10, %p113_p11  ;;  %p714_p0 = pnand %p436_p1, %p70_p5 }
  0x15   : > { %s394_s26 = sshll.u32 %s135_s23, 4  ;;  %p33_p4 = scmp.ge.s32.totalorder %s31_s25, 2 }
  0x16   : > { %p423_p7 = pneg %p706_p13  ;;  %s493_s29 = scalar_lea.hbm %s893_s0, 16 }
  0x17   : > { %p494_p6 = scmp.ne.s32.totalorder %s893_s0, %s493_s29  ;;  %p500_p5 = scmp.lt.u32.totalorder %s493_s29, %s893_s0 }
  0x18   : > { %p424_p2 = pnand %p423_p7, %p685_p3 }
  0x1a   : > { %p495_p10 = pneg %p424_p2 }
  0x1c   : > { %p496_p11 = pnand %p495_p10, %p494_p6 }
  0x1e   : > { %p497_p12 = pneg %p496_p11 }
  0x20   : > { %p502_p1 = pnand %p500_p5, %p497_p12 }
  0x22   : > { %505 = shalt.err (!%p502_p1)
}
  0x23   : > { %s624_s6 = smov [#allocation2]   ;;  %s917_s25 = smov (%p33_p4, %s31_s25), 0 }
  0x24   : > { %426 = dma.hbm_to_smem (!%p424_p2), %s893_s0, 16, %s624_s6, [#allocation5]  }
  0x25   : > { %s413_s15 = sshll.u32 %s618_s13, 8  ;;  %s56_s16 = ssub.s32 %s618_s13, %s917_s25 }
  0x26   : > { %s741_s29 = scalar_lea.hbm %s894_s1, %s413_s15  ;;  %p59_p7 = scmp.eq.s32.totalorder %s56_s16, 0 }
  0x27   : > { %s139_s30 = scalar_lea.vmem [#allocation6], %s394_s26  ;;  %s750_s5 = scalar_lea.sflag [#allocation3], %s135_s23 }
  0x28   : > { %s148_s3 = sshll.u32 %s139_s30, 4  ;;  %s506_s6 = scalar_lea.hbm %s741_s29, 256  ;;  %s743_s3 = int_to_ptr.vmem [resolvable:$true] %s148_s3 }
  0x29   : > { %s748_s4 = scalar_select %p59_p7, %s610_s11, %s61_s17  }
  0x2a   : > { %p507_p12 = scmp.ne.s32.totalorder %s741_s29, %s506_s6  ;;  %p508_p2 = pneg %p714_p0 }
  0x2b   : > { %s511_s26 = scalar_lea.hbm %s894_s1, 512  ;;  %p512_p10 = scmp.lt.u32.totalorder %s741_s29, %s894_s1 }
  0x2c   : > { %p509_p4 = pnand %p508_p2, %p507_p12  ;;  %p513_p11 = scmp.lt.u32.totalorder %s511_s26, %s506_s6 }
  0x2d   : > { %p515_p1 = scmp.lt.u32.totalorder %s506_s6, %s741_s29 }
  0x2e   : > { %p510_p6 = pneg %p509_p4  ;;  %p514_p5 = por %p513_p11, %p512_p10 }
  0x30   : > { %p516_p7 = por %p515_p1, %p514_p5 }
  0x32   : > { %p517_p9 = pnand %p516_p7, %p510_p6 }
  0x34   : > { %520 = shalt.err (!%p517_p9)
}
  0x35   : > { %s521_s17 = scalar_lea.vmem %s743_s3, 256  ;;  %s625_s23 = smov [#allocation6]  }
  0x36   : > { %p522_p12 = scmp.ne.s32.totalorder %s743_s3, %s521_s17  ;;  %s526_s27 = sshll.u32 %s625_s23, 4  ;;  %s527_s27 = int_to_ptr.vmem [resolvable:$false] %s526_s27 }
  0x37   : > { %s528_s28 = scalar_lea.vmem %s527_s27, 512  ;;  %p529_p3 = scmp.lt.s32.totalorder %s743_s3, %s527_s27 }
  0x38   : > { %p524_p4 = pnand %p522_p12, %p508_p2  ;;  %p530_p10 = scmp.lt.s32.totalorder %s528_s28, %s521_s17 }
  0x3a   : > { %p525_p8 = pneg %p524_p4  ;;  %p531_p11 = por %p530_p10, %p529_p3 }
  0x3c   : > { %p532_p5 = pnand %p531_p11, %p525_p8 }
  0x3e   : > { %535 = shalt.err (!%p532_p5)
}
  0x3f   : > { %s626_s30 = smov 128   ;;  %s627_s6 = smov 8  }
  0x40   : > { %430 = dma.hbm_to_vmem [thread:$0]  (!%p714_p0), %s741_s29, 256, %s743_s3, %s750_s5, %s626_s30, %s626_s30, %s627_s6  }
  0x41   : > { %160 = sbr.rel (%p706_p13) target bundleno = 118 (0x76), region = 28  ;;  %p906_p9 = scmp.ne.s32.totalorder (!%p706_p13), %s900_s18, 0 }
  0x48   : > { %589 = dma.done.wait (%p906_p9), [#allocation5], 16  }
  0x49   : > { %591 = vsyncadd (%p906_p9), [#allocation5], 4294967280  ;;  %s785_s7 = sand.u32 1, %s606_s10   ;;  %p907_p3 = scmp.ne.s32.totalorder %s901_s19, 0 }
  0x4a   : > { %s399_s8 = sshll.u32 %s785_s7, 4  ;;  %s167_s26 = scalar_lea.sflag [#allocation3], %s785_s7 }
  0x4b   : > { %s789_s15 = scalar_lea.vmem [#allocation6], %s399_s8 }
  0x4c   : > { %593 = dma.done.wait (%p907_p3), %s167_s26, 256  }
  0x4d   : > { %595 = vsyncadd (%p907_p3), %s167_s26, 4294967040 }
  0x4e   : > { %175 = sfence }
  0x4f   : > { %s400_s18 = sshll.u32 %s785_s7, 6  ;;  %s797_s22 = sshll.u32 %s614_s12, 4  ;;  %v212_v0 = vlaneseq  ;;  %vm238_vm0 = vcmask 130048   ;;  %v628_v3 = vmov 1.0   ;;  %v224_v18 = vld [vmem:[%s789_s15] sm:$0xff]  ;;  %v225_v19 = vld [vmem:[%s789_s15 + $0x8] sm:$0xff] }
  0x50   : > { %s195_s24 = sld [smem:[#allocation2 + %s797_s22]]  ;;  %s196_s29 = sadd.s32 1, %s797_s22 }
  0x51   : > { %s198_s3 = sadd.s32 2, %s797_s22  ;;  %v213_v1 = vand.u32 127, %v212_v0  ;;  %v216_v2 = vshrl.u32 %v212_v0, 7  ;;  %s802_s19 = scalar_lea.vmem [#allocation7], %s400_s18 }
  0x52   : > { %406 = vst.msk [vmem:[%s802_s19 + $0x30] sm:$0xff] %vm238_vm0, %v628_v3  ;;  %407 = vst.msk [vmem:[%s802_s19 + $0x38] sm:$0xff] %vm238_vm0, %v628_v3  ;;  %s197_s5 = sld [smem:[#allocation2 + %s196_s29]]  ;;  %s200_s17 = sadd.s32 4, %s797_s22 }
  0x53   : > { %s808_s16 = sld [smem:[#allocation2 + %s198_s3]]  ;;  %v214_v4 = vcvt.s32.f32 %v213_v1  ;;  %v217_v5 = vadd.s32 8, %v216_v2  ;;  %v222_v6 = vcvt.s32.f32 %v216_v2  ;;  %s202_s27 = sadd.s32 5, %s797_s22 }
  0x54   : > { %s201_s23 = sld [smem:[#allocation2 + %s200_s17]]  ;;  %s204_s28 = sadd.s32 6, %s797_s22 }
  0x55   : > { %v223_v7 = vcvt.s32.f32 %v217_v5  ;;  %s203_s30 = sld [smem:[#allocation2 + %s202_s27]]  ;;  %s206_s8 = sadd.s32 8, %s797_s22 }
  0x56   : > { %v226_v8 = vstv %s195_s24  ;;  %s813_s6 = sld [smem:[#allocation2 + %s204_s28]]  ;;  %s208_s26 = sadd.s32 9, %s797_s22 }
  0x57   : > { %v227_v9 = vmul.f32 %v226_v8, %v214_v4  ;;  %s207_s18 = sld [smem:[#allocation2 + %s206_s8]]  ;;  %s210_s3 = sadd.s32 10, %s797_s22 }
  0x58   : > { %v228_v10 = vstv %s197_s5  ;;  %s209_s29 = sld [smem:[#allocation2 + %s208_s26]]  ;;  %s290_s15 = sshll.u32 %s802_s19, 4  ;;  %s831_s15 = int_to_ptr.vmem [resolvable:$true] %s290_s15 }
  0x59   : > { %v229_v11 = vmul.f32 %v228_v10, %v222_v6  ;;  %v230_v12 = vmul.f32 %v228_v10, %v223_v7  ;;  %v233_v13 = vstv %s808_s16  ;;  %s819_s17 = sld [smem:[#allocation2 + %s210_s3]]  ;;  %s414_s22 = sshll.u32 %s614_s12, 10 }
  0x5a   : > { %v241_v14 = vstv %s201_s23  ;;  %s840_s16 = scalar_lea.hbm %s895_s2, %s414_s22  ;;  %s275_s12 = scalar_lea.sflag [#allocation4], %s785_s7 }
  0x5b   : > { %v231_v15 = vadd.f32 %v229_v11, %v227_v9  ;;  %v232_v16 = vadd.f32 %v230_v12, %v227_v9  ;;  %v242_v17 = vmul.f32 %v241_v14, %v214_v4  ;;  %v243_v20 = vstv %s203_s30  ;;  %s536_s23 = scalar_lea.vmem %s831_s15, 1024  ;;  %p908_p13 = scmp.ne.s32.totalorder %s902_s20, 0 }
  0x5c   : > { %v244_v23 = vmul.f32 %v243_v20, %v222_v6  ;;  %v245_v24 = vmul.f32 %v243_v20, %v223_v7  ;;  %v248_v25 = vstv %s813_s6  ;;  %p537_p8 = scmp.ne.s32.totalorder %s831_s15, %s536_s23  ;;  %s629_s27 = smov [#allocation7]  }
  0x5d   : > { %v234_v21 = vadd.f32 %v233_v13, %v231_v15  ;;  %v235_v22 = vadd.f32 %v233_v13, %v232_v16  ;;  %v256_v26 = vstv %s207_s18  ;;  %s540_s28 = sshll.u32 %s629_s27, 4  ;;  %s541_s28 = int_to_ptr.vmem [resolvable:$false] %s540_s28 }
  0x5e   : > { %v258_v27 = vstv %s209_s29  ;;  %v246_v30 = vadd.f32 %v244_v23, %v242_v17  ;;  %v247_v31 = vadd.f32 %v245_v24, %v242_v17  ;;  %v257_v32 = vmul.f32 %v256_v26, %v214_v4  ;;  %p538_p0 = pnand %p537_p8, %p908_p13  ;;  %s542_s30 = scalar_lea.vmem %s541_s28, 2048 }
  0x5f   : > { %v236_v28 = vmul.f32 %v234_v21, %v224_v18  ;;  %v237_v29 = vmul.f32 %v235_v22, %v225_v19  ;;  %v259_v33 = vmul.f32 %v258_v27, %v222_v6  ;;  %v260_v34 = vmul.f32 %v258_v27, %v223_v7  ;;  %p543_p6 = scmp.lt.s32.totalorder %s831_s15, %s541_s28  ;;  %p544_p1 = scmp.lt.s32.totalorder %s542_s30, %s536_s23 }
  0x60   : > { %v249_v35 = vadd.f32 %v248_v25, %v246_v30  ;;  %v250_v36 = vadd.f32 %v248_v25, %v247_v31  ;;  %v263_v37 = vstv %s819_s17  ;;  %p539_p2 = pneg %p538_p0 }
  0x61   : > { %239 = vst.msk [vmem:[%s802_s19] sm:$0xff] %vm238_vm0, %v236_v28  ;;  %240 = vst.msk [vmem:[%s802_s19 + $0x8] sm:$0xff] %vm238_vm0, %v237_v29  ;;  %v261_v38 = vadd.f32 %v259_v33, %v257_v32  ;;  %v262_v39 = vadd.f32 %v260_v34, %v257_v32  ;;  %p545_p7 = por %p544_p1, %p543_p6 }
  0x62   : > { %v251_v40 = vmul.f32 %v249_v35, %v224_v18  ;;  %v252_v41 = vmul.f32 %v250_v36, %v225_v19 }
  0x63   : > { %v264_v42 = vadd.f32 %v263_v37, %v261_v38  ;;  %v265_v43 = vadd.f32 %v263_v37, %v262_v39  ;;  %p546_p12 = pnand %p545_p7, %p539_p2 }
  0x64   : > { %402 = vst.msk [vmem:[%s802_s19 + $0x10] sm:$0xff] %vm238_vm0, %v251_v40  ;;  %403 = vst.msk [vmem:[%s802_s19 + $0x18] sm:$0xff] %vm238_vm0, %v252_v41 }
  0x65   : > { %v266_v44 = vmul.f32 %v264_v42, %v224_v18  ;;  %v267_v45 = vmul.f32 %v265_v43, %v225_v19 }
  0x67   : > { %404 = vst.msk [vmem:[%s802_s19 + $0x20] sm:$0xff] %vm238_vm0, %v266_v44  ;;  %405 = vst.msk [vmem:[%s802_s19 + $0x28] sm:$0xff] %vm238_vm0, %v267_v45 }
  0x68   : > { %549 = shalt.err (!%p546_p12)
}
  0x69   : > { %s550_s19 = scalar_lea.hbm %s840_s16, 1024  ;;  %s554_s26 = scalar_lea.hbm %s895_s2, 2048 }
  0x6a   : > { %p551_p4 = scmp.ne.s32.totalorder %s840_s16, %s550_s19  ;;  %p555_p5 = scmp.lt.u32.totalorder %s840_s16, %s895_s2 }
  0x6b   : > { %p556_p9 = scmp.lt.u32.totalorder %s554_s26, %s550_s19  ;;  %p558_p8 = scmp.lt.u32.totalorder %s550_s19, %s840_s16 }
  0x6c   : > { %p552_p10 = pnand %p551_p4, %p908_p13 }
  0x6d   : > { %p557_p3 = por %p556_p9, %p555_p5 }
  0x6e   : > { %p553_p11 = pneg %p552_p10 }
  0x6f   : > { %p559_p0 = por %p558_p8, %p557_p3 }
  0x71   : > { %p560_p2 = pnand %p559_p0, %p553_p11 }
  0x73   : > { %563 = shalt.err (!%p560_p2)
}
  0x74   : > { %s630_s3 = smov 128   ;;  %s631_s17 = smov 8  }
  0x75   : > { %421 = dma.vmem_to_hbm [thread:$0]  (%p908_p13), %s831_s15, 1024, %s840_s16, %s275_s12, %s630_s3, %s630_s3, %s631_s17  }
  0x76 PF: > { %s305_s22 = sand.u32 1, %s602_s9   ;;  %p909_p6 = scmp.ne.s32.totalorder %s903_s21, 0 }
  0x77   : > { %p910_p1 = scmp.ge.s32.totalorder %s622_s14, 2  ;;  %s306_s24 = scalar_lea.sflag [#allocation4], %s305_s22 }
  0x79   : > { %p432_p7 = pnand %p910_p1, %p909_p6 }
  0x7b   : > { %597 = dma.done.wait (!%p432_p7), %s306_s24, 1024  }
  0x7c   : > { %599 = vsyncadd (!%p432_p7), %s306_s24, 4294966272  ;;  %s19_s14 = sadd.s32 1, %s622_s14   ;;  %s911_s9 = smov %s606_s10 }
  0x7d   : > { %p16_p12 = scmp.ge.s32.totalorder %s19_s14, 4   ;;  %s912_s10 = smov %s610_s11 }
  0x7e   : > { %s913_s11 = smov %s748_s4  ;;  %s914_s12 = smov %s618_s13 }
  0x7f   : > { %s915_s13 = smov %s917_s25  ;;  %18 = sbr.rel (!%p16_p12) target bundleno = 7 (0x7), region = 81 }
  0x86   :  { %311 = vsyncpa [#allocation3], 1 }
  0x87   :  { %313 = vsyncpa [#allocation3 + $0x1], 1 }
  0x88   :  { %314 = vsyncpa [#allocation4], 1 }
  0x89   :  { %316 = vsyncpa [#allocation4 + $0x1], 1 }
  0x8a   :  { %317 = vsyncpa [#allocation5], 1 }
  0x8b   :  { %319 = vsyncpa [#allocation5 + $0x1], 1 }

</bundles_post_ra>
